<compile_context>
chip_gen: v6e
topology: v6e:2x2x1
jax: 0.10.0
libtpu: 0.0.40
codegen_flags: <defaults>
</compile_context>

<pallas_src>
import functools

import jax
import jax.numpy as jnp
from jax.experimental import pallas as pl
from jax.experimental.pallas import tpu as pltpu

IN_DIM = 28 * 28   # 784
H1_DIM = 128
H2_DIM = 64
OUT_DIM = 10
OUT_PAD = 128      # lane-dense padded output width


def _mlp_kernel(x_ref, w1_ref, b1_ref, w2_ref, b2_ref, w3_ref, b3_ref, o_ref):
    # Whole 3-layer MLP fused on-chip. bf16 operands into the MXU, f32 accumulate,
    # f32 bias/ReLU on the VPU.
    x = x_ref[...].astype(jnp.bfloat16)
    h1 = jnp.dot(x, w1_ref[...], preferred_element_type=jnp.float32) + b1_ref[...]
    h1 = jnp.maximum(h1, 0.0).astype(jnp.bfloat16)
    h2 = jnp.dot(h1, w2_ref[...], preferred_element_type=jnp.float32) + b2_ref[...]
    h2 = jnp.maximum(h2, 0.0).astype(jnp.bfloat16)
    o_ref[...] = (
        jnp.dot(h2, w3_ref[...], preferred_element_type=jnp.float32) + b3_ref[...]
    )


def _round_up(n, m):
    return ((n + m - 1) // m) * m


@functools.partial(jax.jit, static_argnames=("block_b",))
def feedforward_nn(x, params, block_b=512):
    """Forward pass of FeedForwardNN.

    x: any shape whose trailing dims flatten to 784 (e.g. (B, 1, 28, 28)).
    params: dict with w1 (784,128), b1 (128,), w2 (128,64), b2 (64,),
            w3 (64,10), b3 (10,), float32.
    Returns (B, 10) float32 logits.
    """
    x2d = x.reshape(-1, IN_DIM)          # keep incoming dtype; cast in-kernel
    B = x2d.shape[0]

    # Batch tile: large for MXU / pipeline efficiency, shrunk for small batches,
    # batch padded (instead of asserting divisibility) and sliced back at the end.
    block_b = _round_up(max(block_b, 8), 8)
    eff_block = min(block_b, _round_up(B, 8))
    padded_B = _round_up(B, eff_block)
    if padded_B != B:
        x2d = jnp.pad(x2d, ((0, padded_B - B), (0, 0)))

    # bf16 matmul operands (weights are tiny and VMEM-resident), f32 biases.
    w1 = params["w1"].astype(jnp.bfloat16)
    w2 = params["w2"].astype(jnp.bfloat16)
    w3 = params["w3"].astype(jnp.bfloat16)
    b1 = params["b1"].astype(jnp.float32).reshape(1, H1_DIM)
    b2 = params["b2"].astype(jnp.float32).reshape(1, H2_DIM)
    # Pad last layer to 128 output lanes -> unmasked (lane-dense) stores.
    w3 = jnp.pad(w3, ((0, 0), (0, OUT_PAD - OUT_DIM)))
    b3 = jnp.pad(params["b3"].astype(jnp.float32), (0, OUT_PAD - OUT_DIM))
    b3 = b3.reshape(1, OUT_PAD)

    grid = (padded_B // eff_block,)

    def full2d(arr):
        return pl.BlockSpec(arr.shape, lambda i: (0, 0))

    out = pl.pallas_call(
        _mlp_kernel,
        out_shape=jax.ShapeDtypeStruct((padded_B, OUT_PAD), jnp.float32),
        grid_spec=pltpu.PrefetchScalarGridSpec(
            num_scalar_prefetch=0,
            grid=grid,
            in_specs=[
                pl.BlockSpec((eff_block, IN_DIM), lambda i: (i, 0)),   # x tile
                full2d(w1), full2d(b1),
                full2d(w2), full2d(b2),
                full2d(w3), full2d(b3),
            ],
            out_specs=pl.BlockSpec((eff_block, OUT_PAD), lambda i: (i, 0)),
        ),
        compiler_params=pltpu.CompilerParams(
            dimension_semantics=("parallel",),
        ),
    )(x2d, w1, b1, w2, b2, w3, b3)

    return out[:B, :OUT_DIM]


def init_params(key):
    """Deterministic init matching nn.Linear's U(-1/sqrt(fan_in), 1/sqrt(fan_in))."""
    dims = [(IN_DIM, H1_DIM), (H1_DIM, H2_DIM), (H2_DIM, OUT_DIM)]
    params = {}
    for idx, (fan_in, fan_out) in enumerate(dims, start=1):
        key, kw, kb = jax.random.split(key, 3)
        bound = 1.0 / (fan_in ** 0.5)
        params[f"w{idx}"] = jax.random.uniform(
            kw, (fan_in, fan_out), jnp.float32, minval=-bound, maxval=bound
        )
        params[f"b{idx}"] = jax.random.uniform(
            kb, (fan_out,), jnp.float32, minval=-bound, maxval=bound
        )
    return params


def _reference_f32(x, params):
    x2d = x.reshape(-1, IN_DIM).astype(jnp.float32)
    h1 = jnp.maximum(x2d @ params["w1"] + params["b1"], 0.0)
    h2 = jnp.maximum(h1 @ params["w2"] + params["b2"], 0.0)
    return h2 @ params["w3"] + params["b3"]


if __name__ == "__main__":
    key = jax.random.PRNGKey(0)
    kp, kx = jax.random.split(key)
    params = init_params(kp)

    # Small MNIST-like batch (non-multiple of the big default tile exercises the
    # tile-shrink / padding path): (B, 1, 28, 28) NCHW.
    x = jax.random.normal(kx, (32, 1, 28, 28), jnp.float32)

    out = feedforward_nn(x, params)
    out = jax.block_until_ready(out)

    ref = _reference_f32(x, params)
    assert out.shape == (32, 10), out.shape
    # bf16 matmul operands (f32 accumulation) -> loosened tolerance vs f32 reference.
    assert jnp.allclose(out, ref, atol=5e-2, rtol=5e-2), "mismatch vs reference"

    print("KERNEL_OK")
</pallas_src>

<mosaic_0001>
module attributes {stable_mosaic.version = 11 : i64} {
  func.func @_mlp_kernel(%arg0: i32, %arg1: memref<32x784xf32, #tpu.memory_space<vmem>>, %arg2: memref<784x128xbf16, #tpu.memory_space<vmem>>, %arg3: memref<1x128xf32, #tpu.memory_space<vmem>>, %arg4: memref<128x64xbf16, #tpu.memory_space<vmem>>, %arg5: memref<1x64xf32, #tpu.memory_space<vmem>>, %arg6: memref<64x128xbf16, #tpu.memory_space<vmem>>, %arg7: memref<1x128xf32, #tpu.memory_space<vmem>>, %arg8: memref<32x128xf32, #tpu.memory_space<vmem>>) attributes {dimension_semantics = [#tpu.dimension_semantics<parallel>], iteration_bounds = array<i64: 1>, scalar_prefetch = 0 : i64, scratch_operands = 0 : i64, tpu.core_type = #tpu.core_type<tc>, window_params = [{transform_indices = @transform_0, window_bounds = array<i64: 32, 784>}, {pipeline_mode = #tpu.pipeline_mode<synchronous>, transform_indices = @transform_1, window_bounds = array<i64: 784, 128>}, {pipeline_mode = #tpu.pipeline_mode<synchronous>, transform_indices = @transform_2, window_bounds = array<i64: 1, 128>}, {pipeline_mode = #tpu.pipeline_mode<synchronous>, transform_indices = @transform_3, window_bounds = array<i64: 128, 64>}, {pipeline_mode = #tpu.pipeline_mode<synchronous>, transform_indices = @transform_4, window_bounds = array<i64: 1, 64>}, {pipeline_mode = #tpu.pipeline_mode<synchronous>, transform_indices = @transform_5, window_bounds = array<i64: 64, 128>}, {pipeline_mode = #tpu.pipeline_mode<synchronous>, transform_indices = @transform_6, window_bounds = array<i64: 1, 128>}, {transform_indices = @transform_7, window_bounds = array<i64: 32, 128>}]} {
    %c0 = arith.constant 0 : index
    %c0_0 = arith.constant 0 : index
    %0 = vector.load %arg1[%c0, %c0_0] : memref<32x784xf32, #tpu.memory_space<vmem>>, vector<32x784xf32>
    %1 = arith.truncf %0 : vector<32x784xf32> to vector<32x784xbf16>
    %c0_1 = arith.constant 0 : index
    %c0_2 = arith.constant 0 : index
    %2 = vector.load %arg2[%c0_1, %c0_2] : memref<784x128xbf16, #tpu.memory_space<vmem>>, vector<784x128xbf16>
    %cst = arith.constant dense<0.000000e+00> : vector<32x128xf32>
    %3 = tpu.matmul %1, %2, %cst {dimension_numbers = #tpu.dot_dimension_numbers<[1], [0], [0], [1], [0, 0, 1, 1], [], []>} : vector<32x784xbf16>, vector<784x128xbf16>, vector<32x128xf32> -> vector<32x128xf32>
    %c0_3 = arith.constant 0 : index
    %c0_4 = arith.constant 0 : index
    %4 = vector.load %arg3[%c0_3, %c0_4] : memref<1x128xf32, #tpu.memory_space<vmem>>, vector<1x128xf32>
    %5 = vector.broadcast %4 : vector<1x128xf32> to vector<32x128xf32>
    %6 = arith.addf %3, %5 : vector<32x128xf32>
    %cst_5 = arith.constant 0.000000e+00 : f32
    %7 = vector.broadcast %cst_5 : f32 to vector<32x128xf32>
    %8 = arith.maximumf %6, %7 : vector<32x128xf32>
    %9 = arith.truncf %8 : vector<32x128xf32> to vector<32x128xbf16>
    %c0_6 = arith.constant 0 : index
    %c0_7 = arith.constant 0 : index
    %10 = vector.load %arg4[%c0_6, %c0_7] : memref<128x64xbf16, #tpu.memory_space<vmem>>, vector<128x64xbf16>
    %cst_8 = arith.constant dense<0.000000e+00> : vector<32x64xf32>
    %11 = tpu.matmul %9, %10, %cst_8 {dimension_numbers = #tpu.dot_dimension_numbers<[1], [0], [0], [1], [0, 0, 1, 1], [], []>} : vector<32x128xbf16>, vector<128x64xbf16>, vector<32x64xf32> -> vector<32x64xf32>
    %c0_9 = arith.constant 0 : index
    %c0_10 = arith.constant 0 : index
    %12 = vector.load %arg5[%c0_9, %c0_10] : memref<1x64xf32, #tpu.memory_space<vmem>>, vector<1x64xf32>
    %13 = vector.broadcast %12 : vector<1x64xf32> to vector<32x64xf32>
    %14 = arith.addf %11, %13 : vector<32x64xf32>
    %cst_11 = arith.constant 0.000000e+00 : f32
    %15 = vector.broadcast %cst_11 : f32 to vector<32x64xf32>
    %16 = arith.maximumf %14, %15 : vector<32x64xf32>
    %17 = arith.truncf %16 : vector<32x64xf32> to vector<32x64xbf16>
    %c0_12 = arith.constant 0 : index
    %c0_13 = arith.constant 0 : index
    %18 = vector.load %arg6[%c0_12, %c0_13] : memref<64x128xbf16, #tpu.memory_space<vmem>>, vector<64x128xbf16>
    %cst_14 = arith.constant dense<0.000000e+00> : vector<32x128xf32>
    %19 = tpu.matmul %17, %18, %cst_14 {dimension_numbers = #tpu.dot_dimension_numbers<[1], [0], [0], [1], [0, 0, 1, 1], [], []>} : vector<32x64xbf16>, vector<64x128xbf16>, vector<32x128xf32> -> vector<32x128xf32>
    %c0_15 = arith.constant 0 : index
    %c0_16 = arith.constant 0 : index
    %20 = vector.load %arg7[%c0_15, %c0_16] : memref<1x128xf32, #tpu.memory_space<vmem>>, vector<1x128xf32>
    %21 = vector.broadcast %20 : vector<1x128xf32> to vector<32x128xf32>
    %22 = arith.addf %19, %21 : vector<32x128xf32>
    %c0_17 = arith.constant 0 : index
    %c0_18 = arith.constant 0 : index
    %23 = vector.load %arg8[%c0_17, %c0_18] : memref<32x128xf32, #tpu.memory_space<vmem>>, vector<32x128xf32>
    tpu.vector_store %arg8[%c0_17, %c0_18], %22 {strides = array<i32>} : memref<32x128xf32, #tpu.memory_space<vmem>>, vector<32x128xf32>,
    return
  }
  func.func @transform_0(%arg0: i32) -> (i32, i32) {
    %c0_i32 = arith.constant 0 : i32
    %c0_i32_0 = arith.constant 0 : i32
    return %arg0, %c0_i32 : i32, i32
  }
  func.func @transform_1(%arg0: i32) -> (i32, i32) {
    %c0_i32 = arith.constant 0 : i32
    %c0_i32_0 = arith.constant 0 : i32
    %c0_i32_1 = arith.constant 0 : i32
    return %c0_i32, %c0_i32_0 : i32, i32
  }
  func.func @transform_2(%arg0: i32) -> (i32, i32) {
    %c0_i32 = arith.constant 0 : i32
    %c0_i32_0 = arith.constant 0 : i32
    %c0_i32_1 = arith.constant 0 : i32
    return %c0_i32, %c0_i32_0 : i32, i32
  }
  func.func @transform_3(%arg0: i32) -> (i32, i32) {
    %c0_i32 = arith.constant 0 : i32
    %c0_i32_0 = arith.constant 0 : i32
    %c0_i32_1 = arith.constant 0 : i32
    return %c0_i32, %c0_i32_0 : i32, i32
  }
  func.func @transform_4(%arg0: i32) -> (i32, i32) {
    %c0_i32 = arith.constant 0 : i32
    %c0_i32_0 = arith.constant 0 : i32
    %c0_i32_1 = arith.constant 0 : i32
    return %c0_i32, %c0_i32_0 : i32, i32
  }
  func.func @transform_5(%arg0: i32) -> (i32, i32) {
    %c0_i32 = arith.constant 0 : i32
    %c0_i32_0 = arith.constant 0 : i32
    %c0_i32_1 = arith.constant 0 : i32
    return %c0_i32, %c0_i32_0 : i32, i32
  }
  func.func @transform_6(%arg0: i32) -> (i32, i32) {
    %c0_i32 = arith.constant 0 : i32
    %c0_i32_0 = arith.constant 0 : i32
    %c0_i32_1 = arith.constant 0 : i32
    return %c0_i32, %c0_i32_0 : i32, i32
  }
  func.func @transform_7(%arg0: i32) -> (i32, i32) {
    %c0_i32 = arith.constant 0 : i32
    %c0_i32_0 = arith.constant 0 : i32
    return %arg0, %c0_i32 : i32, i32
  }
}

</mosaic_0001>

<bundles_post_ra>
// kernel: feedforward_nn.1
= control target key start
LH: loop header
LB: loop body
LE: loop exit
PB: predicated region body
PF: predicated region fallthrough
CT: control target
= control target key end

     0   :  { %vm468_vm0 = vcmask 130048   ;;  %vm842_vm1 = vcmask 523264   ;;  %s1504_s1 = inlined_call_operand.vmem [shape: bf16[784,128], index: 1, kind: input, shape index: {}]   ;;  %s1505_s0 = inlined_call_operand.vmem [shape: f32[32,784], index: 0, kind: input, shape index: {}]   ;;  %s1506_s3 = inlined_call_operand.vmem [shape: bf16[128,64], index: 3, kind: input, shape index: {}]   ;;  %s1507_s5 = inlined_call_operand.vmem [shape: bf16[64,128], index: 5, kind: input, shape index: {}]   ;;  %s1508_s2 = inlined_call_operand.vmem [shape: f32[1,128], index: 2, kind: input, shape index: {}]   ;;  %s1509_s4 = inlined_call_operand.vmem [shape: f32[1,64], index: 4, kind: input, shape index: {}]   ;;  %s1510_s6 = inlined_call_operand.vmem [shape: f32[1,128], index: 6, kind: input, shape index: {}]   ;;  %s1511_s7 = inlined_call_operand.vmem [shape: f32[32,128], index: 7, kind: output, shape index: {}]  }
   0x1   :  { %v1115_v0 = vld [vmem:[%s1504_s1 + $0x78] sm:$0xff]   ;;  %v1119_v4 = vld [vmem:[%s1504_s1 + $0x70] sm:$0xff]   ;;  %v1123_v8 = vld [vmem:[%s1504_s1 + $0x68] sm:$0xff]  }
   0x2   :  { %v1116_v1 = vld [vmem:[%s1504_s1 + $0x38] sm:$0xff]   ;;  %974 = vmatprep.subr.bf16.mxu0 %v1115_v0  ;;  %v1120_v5 = vld [vmem:[%s1504_s1 + $0x30] sm:$0xff]   ;;  %v1124_v9 = vld [vmem:[%s1504_s1 + $0x28] sm:$0xff]  }
   0x3   :  { %v1117_v2 = vld [vmem:[%s1504_s1 + $0xf8] sm:$0xff]   ;;  %975 = vmatpush3.bf16.msra.mxu0 %v1116_v1  ;;  %v1121_v6 = vld [vmem:[%s1504_s1 + $0xf0] sm:$0xff]   ;;  %v1125_v10 = vld [vmem:[%s1504_s1 + $0xe8] sm:$0xff]  }
   0x4   :  { %v1118_v3 = vld [vmem:[%s1504_s1 + $0xb8] sm:$0xff]   ;;  %1002 = vmatprep.subr.bf16.mxu1 %v1117_v2  ;;  %976 = vmatprep.subr.bf16.mxu0 %v1119_v4  ;;  %v1122_v7 = vld [vmem:[%s1504_s1 + $0xb0] sm:$0xff]   ;;  %v1126_v11 = vld [vmem:[%s1504_s1 + $0xa8] sm:$0xff]  }
   0x5   :  { %1003 = vmatpush3.bf16.msra.mxu1 %v1118_v3  ;;  %v1127_v12 = vld [vmem:[%s1504_s1 + $0x60] sm:$0xff]   ;;  %v1131_v16 = vld [vmem:[%s1504_s1 + $0x58] sm:$0xff]   ;;  %v1135_v20 = vld [vmem:[%s1504_s1 + $0x50] sm:$0xff]  }
   0x6   :  { %1004 = vmatprep.subr.bf16.mxu1 %v1121_v6  ;;  %v1128_v13 = vld [vmem:[%s1504_s1 + $0x20] sm:$0xff]   ;;  %v1132_v17 = vld [vmem:[%s1504_s1 + $0x18] sm:$0xff]   ;;  %v1136_v21 = vld [vmem:[%s1504_s1 + $0x10] sm:$0xff]  }
   0x7   :  { %977 = vmatpush3.bf16.msra.mxu0 %v1120_v5  ;;  %v1129_v14 = vld [vmem:[%s1504_s1 + $0xe0] sm:$0xff]   ;;  %v1133_v18 = vld [vmem:[%s1504_s1 + $0xd8] sm:$0xff]   ;;  %v1137_v22 = vld [vmem:[%s1504_s1 + $0xd0] sm:$0xff]  }
   0x8   :  { %978 = vmatprep.subr.bf16.mxu0 %v1123_v8  ;;  %v1130_v15 = vld [vmem:[%s1504_s1 + $0xa0] sm:$0xff]   ;;  %v1134_v19 = vld [vmem:[%s1504_s1 + $0x98] sm:$0xff]   ;;  %v1138_v23 = vld [vmem:[%s1504_s1 + $0x90] sm:$0xff]  }
   0x9   :  { %1005 = vmatpush3.bf16.msra.mxu1 %v1122_v7  ;;  %v1139_v24 = vld [vmem:[%s1504_s1 + $0x48] sm:$0xff]   ;;  %v1143_v28 = vld [vmem:[%s1504_s1 + $0x40] sm:$0xff]   ;;  %v34_v36 = vld [vmem:[%s1505_s0 + $0x38] sm:$0xff] }
   0xa   :  { %1006 = vmatprep.subr.bf16.mxu1 %v1125_v10  ;;  %v1140_v25 = vld [vmem:[%s1504_s1 + $0x8] sm:$0xff]   ;;  %v1144_v29 = vld [vmem:[%s1504_s1] sm:$0xff]   ;;  %v1147_v38 = vld [vmem:[%s1504_s1 + $0x178] sm:$0xff]  }
   0xb   :  { %979 = vmatpush3.bf16.msra.mxu0 %v1124_v9  ;;  %v1141_v26 = vld [vmem:[%s1504_s1 + $0xc8] sm:$0xff]   ;;  %v1145_v30 = vld [vmem:[%s1504_s1 + $0xc0] sm:$0xff]   ;;  %v30_v39 = vld [vmem:[%s1505_s0 + $0x18] sm:$0xff] }
   0xc   :  { %980 = vmatprep.subr.bf16.mxu0 %v1127_v12  ;;  %v1142_v27 = vld [vmem:[%s1504_s1 + $0x88] sm:$0xff]   ;;  %v35_v32 = vld [vmem:[%s1505_s0 + $0x40] sm:$0xff]  ;;  %v37_v40 = vld [vmem:[%s1505_s0 + $0x50] sm:$0xff] }
   0xd   :  { %1007 = vmatpush3.bf16.msra.mxu1 %v1126_v11  ;;  %v28_v31 = vld [vmem:[%s1505_s0 + $0x8] sm:$0xff]  ;;  %v1146_v34 = vld [vmem:[%s1504_s1 + $0x80] sm:$0xff]   ;;  %v58_v41 = vpack.c.bf16 %v37_v40, %v30_v39  ;;  %v1148_v42 = vld [vmem:[%s1504_s1 + $0x138] sm:$0xff]  }
   0xe   :  { %1008 = vmatprep.subr.bf16.mxu1 %v1129_v14  ;;  %v56_v33 = vpack.c.bf16 %v35_v32, %v28_v31  ;;  %v27_v35 = vld [vmem:[%s1505_s0] sm:$0xff]  ;;  %v29_v43 = vld [vmem:[%s1505_s0 + $0x10] sm:$0xff]  ;;  %v36_v44 = vld [vmem:[%s1505_s0 + $0x48] sm:$0xff] }
   0xf   :  { %981 = vmatpush3.bf16.msra.mxu0 %v1128_v13  ;;  %v55_v37 = vpack.c.bf16 %v34_v36, %v27_v35  ;;  %556 = vmatprep.mubr.bf16.mxu1 %v58_v41  ;;  %v57_v45 = vpack.c.bf16 %v36_v44, %v29_v43  ;;  %v1149_v46 = vld [vmem:[%s1504_s1 + $0x170] sm:$0xff]   ;;  %v1151_v48 = vld [vmem:[%s1504_s1 + $0x168] sm:$0xff]   ;;  %v1153_v50 = vld [vmem:[%s1504_s1 + $0x160] sm:$0xff]  }
  0x10   :  { %982 = vmatprep.subr.bf16.mxu0 %v1131_v16  ;;  %507 = vmatprep.mubr.bf16.mxu0 %v56_v33  ;;  %v1150_v47 = vld [vmem:[%s1504_s1 + $0x130] sm:$0xff]   ;;  %v1152_v49 = vld [vmem:[%s1504_s1 + $0x128] sm:$0xff]   ;;  %v1154_v51 = vld [vmem:[%s1504_s1 + $0x120] sm:$0xff]  }
  0x11   :  { %1009 = vmatpush3.bf16.msra.mxu1 %v1130_v15  ;;  %v42_v52 = vld [vmem:[%s1505_s0 + $0x78] sm:$0xff]  ;;  %v49_v53 = vld [vmem:[%s1505_s0 + $0xb0] sm:$0xff]  ;;  %v48_v57 = vld [vmem:[%s1505_s0 + $0xa8] sm:$0xff] }
  0x12   :  { %1010 = vmatprep.subr.bf16.mxu1 %v1133_v18  ;;  %v1155_v54 = vld [vmem:[%s1504_s1 + $0x158] sm:$0xff]   ;;  %v63_v55 = vpack.c.bf16 %v49_v53, %v42_v52  ;;  %v41_v56 = vld [vmem:[%s1505_s0 + $0x70] sm:$0xff]  ;;  %v44_v59 = vld [vmem:[%s1505_s0 + $0x88] sm:$0xff] }
  0x13   :  { %983 = vmatpush3.bf16.msra.mxu0 %v1132_v17  ;;  %v62_v58 = vpack.c.bf16 %v48_v57, %v41_v56  ;;  %v51_v60 = vld [vmem:[%s1505_s0 + $0xc0] sm:$0xff]  ;;  %v50_v63 = vld [vmem:[%s1505_s0 + $0xb8] sm:$0xff]  ;;  %v1157_v2 = vld [vmem:[%s1504_s1 + $0x150] sm:$0xff]  }
  0x14   :  { %984 = vmatprep.subr.bf16.mxu0 %v1135_v20  ;;  %v43_v61 = vld [vmem:[%s1505_s0 + $0x80] sm:$0xff]  ;;  %v65_v62 = vpack.c.bf16 %v51_v60, %v44_v59  ;;  %v1156_v1 = vld [vmem:[%s1504_s1 + $0x118] sm:$0xff]   ;;  %v1158_v4 = vld [vmem:[%s1504_s1 + $0x110] sm:$0xff]  }
  0x15   :  { %1011 = vmatpush3.bf16.msra.mxu1 %v1134_v19  ;;  %v64_v0 = vpack.c.bf16 %v50_v63, %v43_v61  ;;  %v1161_v3 = vld [vmem:[%s1504_s1 + $0x180] sm:$0xff]   ;;  %v1159_v5 = vld [vmem:[%s1504_s1 + $0x148] sm:$0xff]   ;;  %v33_v9 = vld [vmem:[%s1505_s0 + $0x30] sm:$0xff] }
  0x16   :  { %1012 = vmatprep.subr.bf16.mxu1 %v1137_v22  ;;  %v32_v6 = vld [vmem:[%s1505_s0 + $0x28] sm:$0xff]  ;;  %v39_v7 = vld [vmem:[%s1505_s0 + $0x60] sm:$0xff]  ;;  %v54_v12 = vld [vmem:[%s1505_s0 + $0xd8] sm:$0xff] }
  0x17   :  { %985 = vmatpush3.bf16.msra.mxu0 %v1136_v21  ;;  %v60_v8 = vpack.c.bf16 %v39_v7, %v32_v6  ;;  %v40_v10 = vld [vmem:[%s1505_s0 + $0x68] sm:$0xff]  ;;  %v47_v11 = vld [vmem:[%s1505_s0 + $0xa0] sm:$0xff]  ;;  %v38_v19 = vld [vmem:[%s1505_s0 + $0x58] sm:$0xff] }
  0x18   :  { %986 = vmatprep.subr.bf16.mxu0 %v1139_v24  ;;  %v1160_v13 = vld [vmem:[%s1504_s1 + $0x108] sm:$0xff]   ;;  %v61_v14 = vpack.c.bf16 %v40_v10, %v33_v9  ;;  %v68_v15 = vpack.c.bf16 %v54_v12, %v47_v11  ;;  %v1162_v16 = vld [vmem:[%s1504_s1 + $0x140] sm:$0xff]   ;;  %v46_v20 = vld [vmem:[%s1505_s0 + $0x98] sm:$0xff] }
  0x19   :  { %1013 = vmatpush3.bf16.msra.mxu1 %v1138_v23  ;;  %v1163_v17 = vld [vmem:[%s1504_s1 + $0x100] sm:$0xff]   ;;  %v53_v21 = vld [vmem:[%s1505_s0 + $0xd0] sm:$0xff]  ;;  %v1168_v31 = vld [vmem:[%s1506_s3 + $0x18] sm:$0xff]  }
  0x1a   :  { %1014 = vmatprep.subr.bf16.mxu1 %v1141_v26  ;;  %v31_v18 = vld [vmem:[%s1505_s0 + $0x20] sm:$0xff]  ;;  %v67_v23 = vpack.c.bf16 %v53_v21, %v46_v20  ;;  %v45_v24 = vld [vmem:[%s1505_s0 + $0x90] sm:$0xff]  ;;  %v1170_v33 = vld [vmem:[%s1506_s3 + $0x8] sm:$0xff]  }
  0x1b   :  { %987 = vmatpush3.bf16.msra.mxu0 %v1140_v25  ;;  %v59_v22 = vpack.c.bf16 %v38_v19, %v31_v18  ;;  %v52_v25 = vld [vmem:[%s1505_s0 + $0xc8] sm:$0xff]  ;;  %v1169_v32 = vld [vmem:[%s1506_s3 + $0x10] sm:$0xff]   ;;  %v1172_v35 = vld [vmem:[%s1507_s5 + $0x18] sm:$0xff]  }
  0x1c   :  { %988 = vmatprep.subr.bf16.mxu0 %v1143_v28  ;;  %v66_v26 = vpack.c.bf16 %v52_v25, %v45_v24  ;;  %v1165_v28 = vld [vmem:[%s1506_s3 + $0x30] sm:$0xff]   ;;  %v906_v52 = vld [vmem:[%s1508_s2] ss:$0 sm:$0xff] }
  0x1d   :  { %1015 = vmatpush3.bf16.msra.mxu1 %v1142_v27  ;;  %v1164_v27 = vld [vmem:[%s1506_s3 + $0x38] sm:$0xff]  }
  0x1e   :  { %1016 = vmatprep.subr.bf16.mxu1 %v1145_v30  ;;  %v1167_v30 = vld [vmem:[%s1506_s3 + $0x20] sm:$0xff]  }
  0x1f   :  { %989 = vmatpush3.bf16.msra.mxu0 %v1144_v29  ;;  %v1166_v29 = vld [vmem:[%s1506_s3 + $0x28] sm:$0xff]  }
  0x20   :  { %1030 = vmatprep.subr.bf16.mxu0 %v1147_v38 }
  0x21   :  { %1017 = vmatpush3.bf16.msra.mxu1 %v1146_v34  ;;  %v1171_v34 = vld [vmem:[%s1506_s3] sm:$0xff]  }
  0x22   :  { %508 = vmatmul.mubr.bf16.vlgmr.msra.gmra.mxu0 %v55_v37  ;;  %1077 = vmatprep.subr.bf16.mxu1 %v1161_v3 }
  0x23   :  { %1031 = vmatpush3.bf16.msra.mxu0 %v1148_v42  ;;  %515 = vmatprep.mubr.bf16.mxu0 %v63_v55 }
  0x24   :  { %557 = vmatmul.mubr.bf16.vlgmr.msra.gmra.mxu1 %v57_v45  ;;  %1032 = vmatprep.subr.bf16.mxu0 %v1149_v46 }
  0x25   :  { %564 = vmatprep.mubr.bf16.mxu1 %v65_v62  ;;  %1078 = vmatpush3.bf16.msra.mxu1 %v1161_v3 }
  0x26   :  { %1083 = vmatprep.subr.bf16.mxu1 %v1164_v27 }
  0x27   :  { %1033 = vmatpush3.bf16.msra.mxu0 %v1150_v47 }
  0x28   :  { %1034 = vmatprep.subr.bf16.mxu0 %v1151_v48 }
  0x2a   :  { %516 = vmatmul.mubr.bf16.gmra.mxu0 %v62_v58 }
  0x2b   :  { %1035 = vmatpush3.bf16.msra.mxu0 %v1152_v49  ;;  %605 = vmatprep.mubr.bf16.mxu0 %v60_v8 }
  0x2c   :  { %1036 = vmatprep.subr.bf16.mxu0 %v1153_v50  ;;  %565 = vmatmul.mubr.bf16.gmra.mxu1 %v64_v0 }
  0x2d   :  { %1079 = vmatprep.mubr.msk.bf16.mxu1 %vm468_vm0, %v61_v14 }
  0x2f   :  { %1037 = vmatpush3.bf16.msra.mxu0 %v1154_v51 }
  0x30   :  { %1038 = vmatprep.subr.bf16.mxu0 %v1155_v54 }
  0x33   :  { %1039 = vmatpush3.bf16.msra.mxu0 %v1156_v1 }
  0x34   :  { %1040 = vmatprep.subr.bf16.mxu0 %v1157_v2  ;;  %1080 = vmatmul.mubr.msk.bf16.vlgmr.msra.gmra.mxu1 %vm468_vm0, %v68_v15 }
  0x35   :  { %1084 = vmatpush3.bf16.msra.mxu1 %v1164_v27 }
  0x36   :  { %1085 = vmatprep.subr.bf16.mxu1 %v1165_v28 }
  0x37   :  { %1041 = vmatpush3.bf16.msra.mxu0 %v1158_v4 }
  0x38   :  { %1042 = vmatprep.subr.bf16.mxu0 %v1159_v5 }
  0x39   :  { %1086 = vmatpush3.bf16.msra.mxu1 %v1165_v28 }
  0x3a   :  { %1087 = vmatprep.subr.bf16.mxu1 %v1166_v29 }
  0x3b   :  { %1043 = vmatpush3.bf16.msra.mxu0 %v1160_v13 }
  0x3c   :  { %1044 = vmatprep.subr.bf16.mxu0 %v1162_v16 }
  0x3d   :  { %1088 = vmatpush3.bf16.msra.mxu1 %v1166_v29 }
  0x3e   :  { %1089 = vmatprep.subr.bf16.mxu1 %v1167_v30 }
  0x3f   :  { %1045 = vmatpush3.bf16.msra.mxu0 %v1163_v17 }
  0x40   :  { %1103 = vmatprep.subr.bf16.mxu0 %v1172_v35 }
  0x41   :  { %1090 = vmatpush3.bf16.msra.mxu1 %v1167_v30 }
  0x42   :  { %606 = vmatmul.mubr.bf16.vlgmr.msra.gmra.mxu0 %v59_v22  ;;  %1091 = vmatprep.subr.bf16.mxu1 %v1168_v31 }
  0x43   :  { %613 = vmatprep.mubr.bf16.mxu0 %v67_v23  ;;  %1104 = vmatpush3.bf16.msra.mxu0 %v1172_v35  ;;  %v1173_v35 = vld [vmem:[%s1507_s5 + $0x10] sm:$0xff]  }
  0x44   :  { %1105 = vmatprep.subr.bf16.mxu0 %v1173_v35 }
  0x45   :  { %1092 = vmatpush3.bf16.msra.mxu1 %v1168_v31 }
  0x46   :  { %1093 = vmatprep.subr.bf16.mxu1 %v1169_v32 }
  0x47   :  { %1106 = vmatpush3.bf16.msra.mxu0 %v1173_v35 }
  0x49   :  { %1094 = vmatpush3.bf16.msra.mxu1 %v1169_v32 }
  0x4a   :  { %614 = vmatmul.mubr.bf16.gmra.mxu0 %v66_v26  ;;  %1095 = vmatprep.subr.bf16.mxu1 %v1170_v33 }
  0x4d   :  { %1096 = vmatpush3.bf16.msra.mxu1 %v1170_v33 }
  0x4e   :  { %1097 = vmatprep.subr.bf16.mxu1 %v1171_v34 }
  0x51   :  { %1098 = vmatpush3.bf16.msra.mxu1 %v1171_v34 }
  0xe2   :  { %v990_v37 = vpop.f32.mrf.mxu0 }
  0xe4   :  { %v1018_v36 = vpop.f32.mrf.mxu1  ;;  %v991_v39 = vpop.f32.mrf.mxu0 }
  0xe5   :  { %v992_v51 = vadd.f32 %v991_v39, %v990_v37  ;;  %v1175_v37 = vld [vmem:[%s1507_s5] sm:$0xff]  }
  0xe6   :  { %v1019_v38 = vpop.f32.mrf.mxu1  ;;  %v993_v41 = vpop.f32.mrf.mxu0 }
  0xe7   :  { %v510_v55 = vadd.f32 %v992_v51, %v906_v52  ;;  %v1020_v56 = vadd.f32 %v1019_v38, %v1018_v36  ;;  %v1174_v36 = vld [vmem:[%s1507_s5 + $0x8] sm:$0xff]  }
  0xe8   :  { %v1021_v40 = vpop.f32.mrf.mxu1  ;;  %v994_v44 = vpop.f32.mrf.mxu0  ;;  %1107 = vmatprep.subr.bf16.mxu0 %v1174_v36 }
  0xe9   :  { %v995_v57 = vadd.f32 %v994_v44, %v993_v41  ;;  %v559_v62 = vadd.f32 %v1020_v56, %v510_v55  ;;  %1108 = vmatpush3.bf16.msra.mxu0 %v1174_v36 }
  0xea   :  { %v1022_v42 = vpop.f32.mrf.mxu1  ;;  %v996_v45 = vpop.f32.mrf.mxu0  ;;  %1109 = vmatprep.subr.bf16.mxu0 %v1175_v37 }
  0xeb   :  { %v513_v63 = vadd.f32 %v995_v57, %v906_v52  ;;  %v1023_v0 = vadd.f32 %v1022_v42, %v1021_v40  ;;  %v958_v40 = vld [vmem:[%s1509_s4] ss:$0 sm:$0xff] }
  0xec   :  { %v1024_v43 = vpop.f32.mrf.mxu1  ;;  %v997_v47 = vpop.f32.mrf.mxu0 }
  0xed   :  { %v998_v60 = vadd.f32 %v997_v47, %v996_v45  ;;  %v562_v8 = vadd.f32 %v1023_v0, %v513_v63  ;;  %1110 = vmatpush3.bf16.msra.mxu0 %v1175_v37 }
  0xee   :  { %v1025_v46 = vpop.f32.mrf.mxu1  ;;  %v999_v49 = vpop.f32.mrf.mxu0 }
  0xef   :  { %v518_v5 = vadd.f32 %v998_v60, %v906_v52  ;;  %v1026_v6 = vadd.f32 %v1025_v46, %v1024_v43 }
  0xf0   :  { %v1027_v48 = vpop.f32.mrf.mxu1  ;;  %v1000_v54 = vpop.f32.mrf.mxu0 }
  0xf1   :  { %v1001_v9 = vadd.f32 %v1000_v54, %v999_v49  ;;  %v567_v15 = vadd.f32 %v1026_v6, %v518_v5 }
  0xf2   :  { %v1028_v50 = vpop.f32.mrf.mxu1 }
  0xf3   :  { %v521_v17 = vadd.f32 %v1001_v9, %v906_v52  ;;  %v1029_v18 = vadd.f32 %v1028_v50, %v1027_v48 }
  0xf4   :  { %v1081_v53 = vpop.f32.mrf.mxu1 }
  0xf5   :  { %v570_v26 = vadd.f32 %v1029_v18, %v521_v17 }
  0xf6   :  { %v656_v59 = vpop.f32.mrf.mxu1 }
  0xf8   :  { %v1082_v3 = vpop.f32.mrf.mxu1 }
  0xfa   :  { %v659_v12 = vpop.f32.mrf.mxu1 }
 0x102   :  { %v1046_v58 = vpop.f32.mrf.mxu0 }
 0x104   :  { %v1047_v61 = vpop.f32.mrf.mxu0 }
 0x105   :  { %v1048_v1 = vadd.f32 %v1047_v61, %v1046_v58 }
 0x106   :  { %v1049_v2 = vpop.f32.mrf.mxu0 }
 0x107   :  { %v608_v4 = vadd.f32 %v1048_v1, %v559_v62 }
 0x108   :  { %v1050_v7 = vpop.f32.mrf.mxu0 }
 0x109   :  { %v1051_v10 = vadd.f32 %v1050_v7, %v1049_v2  ;;  %v657_v13 = vadd.f32 %v656_v59, %v608_v4 }
 0x10a   :  { %v1052_v11 = vpop.f32.mrf.mxu0 }
 0x10b   :  { %v611_v14 = vadd.f32 %v1051_v10, %v562_v8  ;;  %v671_v22 = vmax.f32 %v657_v13, 0.0 }
 0x10c   :  { %v1053_v16 = vpop.f32.mrf.mxu0 }
 0x10d   :  { %v1054_v19 = vadd.f32 %v1053_v16, %v1052_v11  ;;  %v660_v20 = vadd.f32 %v659_v12, %v611_v14 }
 0x10e   :  { %v1055_v21 = vpop.f32.mrf.mxu0 }
 0x10f   :  { %v616_v23 = vadd.f32 %v1054_v19, %v567_v15  ;;  %v672_v24 = vmax.f32 %v660_v20, 0.0 }
 0x110   :  { %v1056_v25 = vpop.f32.mrf.mxu0 }
 0x111   :  { %v675_v27 = vpack.c.bf16 %v672_v24, %v671_v22  ;;  %v1057_v28 = vadd.f32 %v1056_v25, %v1055_v21  ;;  %v665_v29 = vadd.f32 %v1081_v53, %v616_v23  ;;  %v967_v53 = vld [vmem:[%s1510_s6] ss:$0 sm:$0xff] }
 0x113   :  { %v619_v30 = vadd.f32 %v1057_v28, %v570_v26  ;;  %1099 = vmatprep.mubr.bf16.mxu1 %v675_v27  ;;  %v673_v32 = vmax.f32 %v665_v29, 0.0 }
 0x115   :  { %v668_v31 = vadd.f32 %v1082_v3, %v619_v30 }
 0x117   :  { %v674_v33 = vmax.f32 %v668_v31, 0.0 }
 0x119   :  { %v676_v34 = vpack.c.bf16 %v674_v33, %v673_v32 }
 0x11b   :  { %1100 = vmatmul.mubr.bf16.vlgmr.msra.gmra.mxu1 %v676_v34 }
 0x1db   :  { %v1101_v38 = vpop.f32.mrf.mxu1 }
 0x1dc   :  { %v791_v44 = vadd.f32 %v1101_v38, %v958_v40 }
 0x1dd   :  { %v782_v39 = vpop.f32.mrf.mxu1 }
 0x1de   :  { %v783_v42 = vadd.f32 %v958_v40, %v782_v39  ;;  %v799_v50 = vmax.f32 %v791_v44, 0.0 }
 0x1df   :  { %v1102_v41 = vpop.f32.mrf.mxu1 }
 0x1e0   :  { %v794_v43 = vadd.f32 %v1102_v41, %v958_v40  ;;  %v797_v48 = vmax.f32 %v783_v42, 0.0 }
 0x1e1   :  { %v785_v45 = vpop.f32.mrf.mxu1 }
 0x1e2   :  { %v786_v46 = vadd.f32 %v958_v40, %v785_v45  ;;  %v800_v47 = vmax.f32 %v794_v43, 0.0 }
 0x1e4   :  { %v798_v49 = vmax.f32 %v786_v46, 0.0  ;;  %v802_v52 = vpack.c.bf16 %v800_v47, %v799_v50 }
 0x1e6   :  { %v801_v51 = vpack.c.bf16 %v798_v49, %v797_v48 }
 0x1e8   :  { %1111 = vmatprep.mubr.msk.bf16.mxu0 %vm842_vm1, %v801_v51 }
 0x1e9   :  { %1112 = vmatmul.mubr.msk.bf16.vlgmr.msra.gmra.mxu0 %vm842_vm1, %v802_v52 }
 0x2a9   :  { %v1113_v54 = vpop.f32.mrf.mxu0 }
 0x2aa   :  { %v892_v55 = vadd.f32 %v1113_v54, %v967_v53 }
 0x2ab   :  { %v883_v56 = vpop.f32.mrf.mxu0 }
 0x2ac   :  { %900 = vst [vmem:[%s1511_s7 + $0x10] sm:$0xff] %v892_v55  ;;  %v884_v57 = vadd.f32 %v967_v53, %v883_v56 }
 0x2ad   :  { %v1114_v58 = vpop.f32.mrf.mxu0 }
 0x2ae   :  { %898 = vst [vmem:[%s1511_s7] sm:$0xff] %v884_v57  ;;  %v895_v59 = vadd.f32 %v1114_v58, %v967_v53 }
 0x2af   :  { %v886_v60 = vpop.f32.mrf.mxu0 }
 0x2b0   :  { %901 = vst [vmem:[%s1511_s7 + $0x18] sm:$0xff] %v895_v59  ;;  %v887_v61 = vadd.f32 %v967_v53, %v886_v60 }
 0x2b2   :  { %899 = vst [vmem:[%s1511_s7 + $0x8] sm:$0xff] %v887_v61 }

</bundles_post_ra>
